<compile_context>
chip_gen: v7x
topology: tpu7x:2x2x1
jax: 0.10.0
libtpu: 0.0.40
codegen_flags: <defaults>
</compile_context>

<pallas_src>
import functools

import jax
import jax.numpy as jnp
from jax.experimental import pallas as pl
from jax.experimental.pallas import tpu as pltpu


def _round_up(x, m):
    return ((x + m - 1) // m) * m


def _soft_ova_kernel(n_classes, has_unk, *refs):
    # refs: x_ref [tile_b, 2*C] (native dtype), lab_ref [tile_b, C],
    #       (unk_ref [tile_b, 1] if has_unk), out_ref [1, 1, tile_b] f32
    if has_unk:
        x_ref, lab_ref, unk_ref, out_ref = refs
    else:
        x_ref, lab_ref, out_ref = refs

    c = n_classes
    x = x_ref[...]
    l0 = x[:, :c]                       # native dtype
    l1 = x[:, c:]                       # native dtype
    # difference in the native dtype (bf16 VALU on v6e/v7x), accumulate in f32
    d = (l0 - l1).astype(jnp.float32)
    lab = lab_ref[...].astype(jnp.float32)

    # 2-way OVA softmax + logs via softplus:
    #   -log p1 = softplus(d),  -log p0 = softplus(-d) = relu(-d) + log(1+exp(-|d|))
    nd = -d
    sp_neg = jnp.maximum(nd, 0.0) + jnp.log(1.0 + jnp.exp(jnp.minimum(d, nd)))

    # per-element loss = -log(p1)*lab_sp - log(p0)*(1-lab_sp)
    #                  = softplus(-d) + d * lab * (1 - unk)
    base = jnp.sum(sp_neg, axis=1)      # [tile_b]
    pos = jnp.sum(d * lab, axis=1)      # [tile_b]
    if has_unk:
        unk = unk_ref[...].astype(jnp.float32).reshape(-1)   # [tile_b]
        per_sample = base + (1.0 - unk) * pos
    else:
        per_sample = base + pos

    out_ref[...] = per_sample.reshape(1, 1, -1)


def soft_ova_ood_loss(logits_open, targets_soft, unk_idx=None,
                      reduction="mean", tile_b=None):
    """JAX/Pallas equivalent of SoftOVAOODLoss.forward.

    logits_open : [B, 2, C] (or [B, 2*C]), any float dtype
    targets_soft: [B, C] soft labels
    unk_idx     : optional bool [B] marking "unknown" samples
    reduction   : 'none' -> per-sample loss [B]; anything else -> mean
                  (the PyTorch module treats every non-'none' reduction as mean)
    """
    B = logits_open.shape[0]
    logits_open = logits_open.reshape(B, 2, -1)
    C = logits_open.shape[-1]
    has_unk = unk_idx is not None

    # One contiguous [B, 2*C] slab in the logits' native dtype (free reshape,
    # no pad, no cast): l0 = first C lanes, l1 = last C lanes.
    x = logits_open.reshape(B, 2 * C)
    lab = targets_soft

    if tile_b is None:
        # ~2 MiB of input per grid step (dtype-aware): big enough for 85%+ of
        # HBM roofline, small enough that double buffering + in-kernel f32
        # temporaries stay well inside every generation's scoped VMEM.
        bytes_per_row = (2 * C * x.dtype.itemsize + C * lab.dtype.itemsize
                         + (4 if has_unk else 0))
        tile_b = max(8, (2 * 1024 * 1024) // max(bytes_per_row, 1))
    if B > 8:
        # >= 2 grid steps so the "parallel" axis can shard across v7x's 2 TCs.
        tile_b = min(tile_b, _round_up(-(-B // 2), 8))
    tile_b = max(8, min(tile_b, _round_up(B, 8)))
    tile_b = (tile_b // 8) * 8
    # Ragged last block: no batch padding; OOB rows are discarded by [:B] below.
    num_tiles = pl.cdiv(B, tile_b)

    in_specs = [
        pl.BlockSpec((tile_b, 2 * C), lambda i: (i, 0)),
        pl.BlockSpec((tile_b, C), lambda i: (i, 0)),
    ]
    args = [x, lab]
    if has_unk:
        unk = jnp.asarray(unk_idx).astype(jnp.float32).reshape(B, 1)
        in_specs.append(pl.BlockSpec((tile_b, 1), lambda i: (i, 0)))
        args.append(unk)

    kernel = functools.partial(_soft_ova_kernel, C, has_unk)

    per_sample = pl.pallas_call(
        kernel,
        out_shape=jax.ShapeDtypeStruct((num_tiles, 1, tile_b), jnp.float32),
        grid_spec=pltpu.PrefetchScalarGridSpec(
            num_scalar_prefetch=0,
            grid=(num_tiles,),
            in_specs=in_specs,
            out_specs=pl.BlockSpec((1, 1, tile_b), lambda i: (i, 0, 0)),
        ),
        compiler_params=pltpu.CompilerParams(
            dimension_semantics=("parallel",),
            vmem_limit_bytes=32 * 1024 * 1024),
    )(*args)

    # Drop the ragged-tail rows BEFORE any reduction (they hold garbage).
    per_sample = per_sample.reshape(num_tiles * tile_b)[:B]
    if reduction == "none":
        return per_sample
    # mean(pos) + mean(neg) == mean(pos + neg)
    return jnp.mean(per_sample)


def _reference(logits_open, targets_soft, unk_idx=None, reduction="mean"):
    B = logits_open.shape[0]
    logits_open = logits_open.reshape(B, 2, -1).astype(jnp.float32)
    p = jax.nn.softmax(logits_open, axis=1)
    lab = targets_soft.astype(jnp.float32)
    if unk_idx is not None:
        lab = jnp.where(unk_idx[:, None], 0.0, lab)
    lab_neg = 1.0 - lab
    pos = jnp.sum(-jnp.log(p[:, 1, :] + 1e-8) * lab, axis=1)
    neg = jnp.sum(-jnp.log(p[:, 0, :] + 1e-8) * lab_neg, axis=1)
    if reduction == "none":
        return pos + neg
    return jnp.mean(pos) + jnp.mean(neg)


if __name__ == "__main__":
    key = jax.random.PRNGKey(0)
    k1, k2, k3, k4, k5, k6, k7 = jax.random.split(key, 7)

    # Config 1: module-sized shapes (bsz=8, n_classes=16), f32, with unk mask.
    B, C = 8, 16
    logits_open = jax.random.normal(k1, (B, 2, C), jnp.float32)
    targets_soft = jax.nn.softmax(jax.random.normal(k2, (B, C), jnp.float32), -1)
    unk_idx = jax.random.bernoulli(k3, 0.25, (B,))

    loss = jax.block_until_ready(
        soft_ova_ood_loss(logits_open, targets_soft, unk_idx, reduction="mean"))
    ref = _reference(logits_open, targets_soft, unk_idx, reduction="mean")
    assert jnp.allclose(loss, ref, rtol=1e-4, atol=1e-4), (loss, ref)

    loss_none = jax.block_until_ready(
        soft_ova_ood_loss(logits_open, targets_soft, unk_idx, reduction="none"))
    ref_none = _reference(logits_open, targets_soft, unk_idx, reduction="none")
    assert jnp.allclose(loss_none, ref_none, rtol=1e-4, atol=1e-4), (loss_none, ref_none)

    # Config 2: bf16 logits on the wire, C=128, no unk mask (specialized
    # kernel, no unk DMA), 2 grid tiles.
    B2, C2 = 16, 128
    logits2 = jax.random.normal(k4, (B2, 2, C2), jnp.float32).astype(jnp.bfloat16)
    targets2 = jax.nn.softmax(jax.random.normal(k5, (B2, C2), jnp.float32), -1)
    loss2 = jax.block_until_ready(
        soft_ova_ood_loss(logits2, targets2, None, reduction="none", tile_b=8))
    ref2 = _reference(logits2.astype(jnp.float32), targets2, None, reduction="none")
    assert jnp.allclose(loss2, ref2, rtol=2e-2, atol=2e-2), (loss2, ref2)

    # Config 3: ragged batch (B=10 -> tile_b=8, partial last block), with unk,
    # exercising the no-pad ragged-grid path end to end.
    B3, C3 = 10, 16
    logits3 = jax.random.normal(k6, (B3, 2, C3), jnp.float32)
    targets3 = jax.nn.softmax(jax.random.normal(k7, (B3, C3), jnp.float32), -1)
    unk3 = jnp.arange(B3) % 3 == 0
    loss3 = jax.block_until_ready(
        soft_ova_ood_loss(logits3, targets3, unk3, reduction="mean"))
    ref3 = _reference(logits3, targets3, unk3, reduction="mean")
    assert jnp.allclose(loss3, ref3, rtol=1e-4, atol=1e-4), (loss3, ref3)

    print("KERNEL_OK")
</pallas_src>

<mosaic_0001>
module attributes {stable_mosaic.version = 11 : i64} {
  func.func @_soft_ova_kernel(%arg0: i32, %arg1: memref<8x32xf32, #tpu.memory_space<vmem>>, %arg2: memref<8x16xf32, #tpu.memory_space<vmem>>, %arg3: memref<8x1xf32, #tpu.memory_space<vmem>>, %arg4: memref<1x1x8xf32, #tpu.memory_space<vmem>>) attributes {dimension_semantics = [#tpu.dimension_semantics<parallel>], iteration_bounds = array<i64: 1>, scalar_prefetch = 0 : i64, scratch_operands = 0 : i64, tpu.core_type = #tpu.core_type<tc>, window_params = [{transform_indices = @transform_0, window_bounds = array<i64: 8, 32>}, {transform_indices = @transform_1, window_bounds = array<i64: 8, 16>}, {transform_indices = @transform_2, window_bounds = array<i64: 8, 1>}, {transform_indices = @transform_3, window_bounds = array<i64: 1, 1, 8>}]} {
    %c0 = arith.constant 0 : index
    %c0_0 = arith.constant 0 : index
    %0 = vector.load %arg1[%c0, %c0_0] : memref<8x32xf32, #tpu.memory_space<vmem>>, vector<8x32xf32>
    %1 = vector.extract_strided_slice %0 {offsets = [0, 0], sizes = [8, 16], strides = [1, 1]} : vector<8x32xf32> to vector<8x16xf32>
    %2 = vector.extract_strided_slice %0 {offsets = [0, 16], sizes = [8, 16], strides = [1, 1]} : vector<8x32xf32> to vector<8x16xf32>
    %3 = arith.subf %1, %2 : vector<8x16xf32>
    %c0_1 = arith.constant 0 : index
    %c0_2 = arith.constant 0 : index
    %4 = vector.load %arg2[%c0_1, %c0_2] : memref<8x16xf32, #tpu.memory_space<vmem>>, vector<8x16xf32>
    %cst = arith.constant 0.000000e+00 : f32
    %5 = vector.broadcast %cst : f32 to vector<8x16xf32>
    %6 = arith.subf %5, %3 : vector<8x16xf32>
    %cst_3 = arith.constant 0.000000e+00 : f32
    %7 = vector.broadcast %cst_3 : f32 to vector<8x16xf32>
    %8 = arith.maximumf %6, %7 : vector<8x16xf32>
    %9 = arith.minimumf %3, %6 : vector<8x16xf32>
    %10 = math.exp %9 : vector<8x16xf32>
    %cst_4 = arith.constant 1.000000e+00 : f32
    %11 = vector.broadcast %cst_4 : f32 to vector<8x16xf32>
    %12 = arith.addf %11, %10 : vector<8x16xf32>
    %13 = math.log %12 : vector<8x16xf32>
    %14 = arith.addf %8, %13 : vector<8x16xf32>
    %cst_5 = arith.constant dense<0.000000e+00> : vector<8xf32>
    %15 = vector.multi_reduction <add>, %14, %cst_5 [1] : vector<8x16xf32> to vector<8xf32>
    %16 = arith.mulf %3, %4 : vector<8x16xf32>
    %cst_6 = arith.constant dense<0.000000e+00> : vector<8xf32>
    %17 = vector.multi_reduction <add>, %16, %cst_6 [1] : vector<8x16xf32> to vector<8xf32>
    %c0_7 = arith.constant 0 : index
    %c0_8 = arith.constant 0 : index
    %18 = vector.load %arg3[%c0_7, %c0_8] : memref<8x1xf32, #tpu.memory_space<vmem>>, vector<8x1xf32>
    %19 = vector.shape_cast %18 : vector<8x1xf32> to vector<8xf32>
    %cst_9 = arith.constant 1.000000e+00 : f32
    %20 = vector.broadcast %cst_9 : f32 to vector<8xf32>
    %21 = arith.subf %20, %19 : vector<8xf32>
    %22 = arith.mulf %21, %17 : vector<8xf32>
    %23 = arith.addf %15, %22 : vector<8xf32>
    %24 = vector.shape_cast %23 : vector<8xf32> to vector<1x1x8xf32>
    %c0_10 = arith.constant 0 : index
    %c0_11 = arith.constant 0 : index
    %c0_12 = arith.constant 0 : index
    %25 = vector.load %arg4[%c0_10, %c0_11, %c0_12] : memref<1x1x8xf32, #tpu.memory_space<vmem>>, vector<1x1x8xf32>
    tpu.vector_store %arg4[%c0_10, %c0_11, %c0_12], %24 {strides = array<i32>} : memref<1x1x8xf32, #tpu.memory_space<vmem>>, vector<1x1x8xf32>,
    return
  }
  func.func @transform_0(%arg0: i32) -> (i32, i32) {
    %c0_i32 = arith.constant 0 : i32
    %c0_i32_0 = arith.constant 0 : i32
    return %arg0, %c0_i32 : i32, i32
  }
  func.func @transform_1(%arg0: i32) -> (i32, i32) {
    %c0_i32 = arith.constant 0 : i32
    %c0_i32_0 = arith.constant 0 : i32
    return %arg0, %c0_i32 : i32, i32
  }
  func.func @transform_2(%arg0: i32) -> (i32, i32) {
    %c0_i32 = arith.constant 0 : i32
    %c0_i32_0 = arith.constant 0 : i32
    return %arg0, %c0_i32 : i32, i32
  }
  func.func @transform_3(%arg0: i32) -> (i32, i32, i32) {
    %c0_i32 = arith.constant 0 : i32
    %c0_i32_0 = arith.constant 0 : i32
    %c0_i32_1 = arith.constant 0 : i32
    return %arg0, %c0_i32, %c0_i32_0 : i32, i32, i32
  }
}

</mosaic_0001>

<bundles_post_ra>
// kernel: tpu_custom_call.1
= control target key start
LH: loop header
LB: loop body
LE: loop exit
PB: predicated region body
PF: predicated region fallthrough
CT: control target
= control target key end

     0   :  { %8 = vsyncpa [#allocation3], 0  ;;  %s195_s0 = inlined_call_operand.vmem [shape: f32[8,32], index: 0, kind: input, shape index: {}]   ;;  %s196_s1 = inlined_call_operand.hbm [shape: f32[8,16], index: 1, kind: input, shape index: {}]   ;;  %s197_s2 = inlined_call_operand.vmem [shape: f32[8,1], index: 2, kind: input, shape index: {}]   ;;  %s198_s3 = inlined_call_operand.hbm [shape: f32[1,1,8], index: 3, kind: output, shape index: {}]  }
   0x1   :  { %9 = vsyncpa [#allocation4], 0  ;;  %s141_s12 = smov [#allocation2]   ;;  %s93_s16 = scalar_lea.hbm %s196_s1, 128 }
   0x2   :  { %s18_s13 = sshll.u32 %s141_s12, 4  ;;  %p94_p0 = scmp.ne.s32.totalorder %s196_s1, %s93_s16  ;;  %s19_s13 = int_to_ptr.vmem [resolvable:$true] %s18_s13 }
   0x3   :  { %p97_p1 = scmp.lt.u32.totalorder %s93_s16, %s196_s1 }
   0x5   :  { %p99_p2 = pnand %p97_p1, %p94_p0 }
   0x7   :  { %102 = shalt.err (!%p99_p2)
}
   0x8   :  { %s103_s21 = scalar_lea.vmem %s19_s13, 128  ;;  %p108_p4 = scmp.lt.s32.totalorder %s19_s13, %s19_s13 }
   0x9   :  { %p104_p3 = scmp.ne.s32.totalorder %s19_s13, %s103_s21  ;;  %p109_p5 = scmp.lt.s32.totalorder %s103_s21, %s103_s21 }
   0xb   :  { %p110_p6 = por %p109_p5, %p108_p4 }
   0xd   :  { %p111_p7 = pnand %p110_p6, %p104_p3 }
   0xf   :  { %114 = shalt.err (!%p111_p7)
}
  0x10   :  { %21 = dma.hbm_to_vmem [thread:$0]  %s196_s1, 128, %s19_s13, [#allocation3]  }
  0x11   :  { %137 = dma.done.wait [#allocation3], 128  }
  0x12   :  { %138 = vsyncadd [#allocation3], 4294967168  ;;  %v27_v0 = vld [vmem:[%s195_s0] sm:$0xff]  ;;  %s142_s26 = smov 112   ;;  %vm43_vm0 = vcmask 130048   ;;  %v143_v16 = vmov 0   ;;  %v59_v23 = vlaneseq }
  0x13   :  { %29 = vrot.lane.b32.xlu0 %v27_v0, %s142_s26  ;;  %v33_v2 = vld [vmem:[#allocation2] sm:$0xff]  ;;  %87 = vset.pattern.permute.xlu1 %v143_v16  ;;  %s144_s27 = smov [#allocation5]   ;;  %vm66_vm1 = vcmask 57344  }
  0x14   :  { %88 = vset.pattern.permute.xlu0 %v143_v16  ;;  %v51_v17 = vld [vmem:[%s197_s2] sm:$0xff]  ;;  %v60_v24 = vand.u32 127, %v59_v23  ;;  %v62_v25 = vshrl.u32 %v59_v23, 7  ;;  %s74_s28 = sshll.u32 %s144_s27, 4  ;;  %s75_s28 = int_to_ptr.vmem [resolvable:$true] %s74_s28 }
  0x15   :  { %v52_v18 = vsub.f32 1.0, %v51_v17  ;;  %s115_s29 = scalar_lea.vmem %s75_s28, 16  ;;  %s119_s2 = scalar_lea.vmem %s75_s28, 32 }
  0x16   :  { %v63_v26 = vsub.s32 %v60_v24, %v62_v25  ;;  %p116_p8 = scmp.ne.s32.totalorder %s75_s28, %s115_s29  ;;  %p120_p9 = scmp.lt.s32.totalorder %s75_s28, %s75_s28 }
  0x17   :  { %p121_p10 = scmp.lt.s32.totalorder %s119_s2, %s115_s29 }
  0x19   :  { %p122_p11 = por %p121_p10, %p120_p9 }
  0x1b   :  { %p123_p12 = pnand %p122_p11, %p116_p8 }
  0x85   :  { %v30_v1 = vpop.permute.xlu0 %29 }
  0x86   :  { %v32_v3 = vsub.f32 %v27_v0, %v30_v1 }
  0x88   :  { %v34_v4 = vsub.f32 0.0, %v32_v3  ;;  %v47_v5 = vmul.f32 %v33_v2, %v32_v3 }
  0x8a   :  { %v36_v6 = vmin.f32 %v32_v3, %v34_v4  ;;  %v48_v7 = vsel %vm43_vm0, %v47_v5, 0.0  ;;  %v35_v12 = vmax.f32 %v34_v4, 0.0 }
  0x8b   :  { %49 = vadd.xlane.f32.xlu0 %v48_v7 }
  0x8c   :  { %v37_v8 = vmul.f32 1.442695, %v36_v6 }
  0x8e   :  { %89 = vpow2.f32 %v37_v8 }
  0x98   :  { %v90_v9 = vpop.eup %89 }
  0x99   :  { %v39_v10 = vadd.f32 1.0, %v90_v9 }
  0x9b   :  { %91 = vlog2.f32 %v39_v10 }
  0xa5   :  { %v92_v11 = vpop.eup %91 }
  0xa6   :  { %v41_v13 = vmul.f32 0.6931472, %v92_v11 }
  0xa8   :  { %v42_v14 = vadd.f32 %v41_v13, %v35_v12 }
  0xaa   :  { %v44_v15 = vsel %vm43_vm0, %v42_v14, 0.0 }
  0xab   :  { %45 = vadd.xlane.f32.xlu1 %v44_v15 }
 0x118   :  { %v50_v19 = vpop.xlane.xlu0 %49 }
 0x119   :  { %v53_v20 = vmul.f32 %v52_v18, %v50_v19 }
 0x138   :  { %v46_v21 = vpop.xlane.xlu1 %45 }
 0x139   :  { %v54_v22 = vadd.f32 %v53_v20, %v46_v21 }
 0x13b   :  { %57 = vperm.xlu1 %87, %v54_v22  }
 0x1ba   :  { %v58_v27 = vpop.permute.xlu1 %57 }
 0x1bb   :  { %v64_v28 = vrot.slane %v58_v27, %v63_v26 }
 0x1bd   :  { %67 = vst.msk [vmem:[#allocation5] sm:$0x1] %vm66_vm1, %v64_v28 }
 0x1be   :  { %126 = shalt.err (!%p123_p12)
}
 0x1bf   :  { %s127_s5 = scalar_lea.hbm %s198_s3, 16 }
 0x1c0   :  { %p128_p13 = scmp.ne.s32.totalorder %s198_s3, %s127_s5  ;;  %p131_p0 = scmp.lt.u32.totalorder %s127_s5, %s198_s3 }
 0x1c2   :  { %p133_p1 = pnand %p131_p0, %p128_p13 }
 0x1c4   :  { %136 = shalt.err (!%p133_p1)
}
 0x1c5   :  { %77 = dma.vmem_to_hbm [thread:$0]  %s75_s28, 16, %s198_s3, [#allocation4]  }
 0x1c6   :  { %139 = dma.done.wait [#allocation4], 16  }
 0x1c7   :  { %140 = vsyncadd [#allocation4], 4294967280 }
 0x1c8   :  { %81 = vsyncpa [#allocation3], 1 }
 0x1c9   :  { %82 = vsyncpa [#allocation4], 1 }

</bundles_post_ra>
